<compile_context>
chip_gen: v6e
topology: v6e:2x2x1
jax: 0.10.0
libtpu: 0.0.40
codegen_flags: <defaults>
</compile_context>

<pallas_src>
import jax
import jax.numpy as jnp
from jax.experimental import pallas as pl
from jax.experimental.pallas import tpu as pltpu


def _round_up(x, m):
    return ((x + m - 1) // m) * m


def _make_dice_kernel(chunk, hw, n_k, tr):
    """Kernel for (tr, chunk) blocks over a row of hw valid lanes."""
    n_folds = chunk // 128
    tail = hw - (n_k - 1) * chunk          # valid lanes in the last HW step (1..chunk)
    ragged = tail != chunk
    tail_full = tail // 128                # complete 128-lane folds in the tail step
    tail_rem = tail % 128                  # valid lanes in the partial fold (0 => none)

    def _accum(x_ref, t_ref, n_full, rem):
        # Register accumulation across folds; one VMEM += per grid step.
        p = jnp.zeros((tr, 128), jnp.float32)
        tq = jnp.zeros((tr, 128), jnp.float32)
        xq = jnp.zeros((tr, 128), jnp.float32)
        for j in range(n_full):
            sl = slice(j * 128, (j + 1) * 128)
            xs = x_ref[:, sl].astype(jnp.float32)
            ts = t_ref[:, sl].astype(jnp.float32)
            p = p + xs * ts
            tq = tq + ts * ts
            xq = xq + xs * xs
        if rem:
            # Partial fold: mask lanes beyond the valid extent (OOB data is
            # unspecified and must not contaminate the sums).
            sl = slice(n_full * 128, (n_full + 1) * 128)
            lane = jax.lax.broadcasted_iota(jnp.int32, (tr, 128), 1)
            keep = lane < rem
            xs = jnp.where(keep, x_ref[:, sl].astype(jnp.float32), 0.0)
            ts = jnp.where(keep, t_ref[:, sl].astype(jnp.float32), 0.0)
            p = p + xs * ts
            tq = tq + ts * ts
            xq = xq + xs * xs
        return p, tq, xq

    def kernel(x_ref, t_ref, o_ref, prod_acc, tsq_acc, xsq_acc):
        k = pl.program_id(1)
        last_k = pl.num_programs(1) - 1

        @pl.when(k == 0)
        def _():
            prod_acc[...] = jnp.zeros_like(prod_acc)
            tsq_acc[...] = jnp.zeros_like(tsq_acc)
            xsq_acc[...] = jnp.zeros_like(xsq_acc)

        def flush(p, tq, xq):
            prod_acc[...] += p
            tsq_acc[...] += tq
            xsq_acc[...] += xq

        if not ragged:
            flush(*_accum(x_ref, t_ref, n_folds, 0))
        else:
            @pl.when(k != last_k)
            def _():
                flush(*_accum(x_ref, t_ref, n_folds, 0))

            @pl.when(k == last_k)
            def _():
                flush(*_accum(x_ref, t_ref, tail_full, tail_rem))

        @pl.when(k == last_k)
        def _():
            eps = jnp.float32(0.0001)
            num = 2.0 * jnp.sum(prod_acc[...], axis=1, keepdims=True) + eps
            # Single cross-lane reduce for the denominator.
            den = jnp.sum(tsq_acc[...] + xsq_acc[...], axis=1, keepdims=True) + eps
            o_ref[...] = 1.0 - num / den

    return kernel


def _pick_row_tile(n_rows, min_sublane):
    """Row tile: multiple of the min sublane tile (or full extent), capped at 128."""
    cap = 128   # 3 live (tr,128) f32 register partials = 48 vregs at tr=128: fits.
    if n_rows <= min_sublane:
        return n_rows                      # full extent is always a legal block dim
    # Aim for >= 4 row tiles so the "parallel" row axis can shard across the
    # two TensorCores on v7x; a ragged last row tile is safe (masked output).
    target = -(-n_rows // 4)
    tr = _round_up(max(target, min_sublane), min_sublane)
    return min(tr, cap)


def _pick_chunk(hw, row_tile, bytes_per_elem_pair):
    """HW chunk: multiple of 128, picked from a ~8 MiB single-buffer budget."""
    budget = 8 * 1024 * 1024
    max_chunk = budget // max(1, row_tile * bytes_per_elem_pair)
    max_chunk = max(128, (max_chunk // 128) * 128)
    hw_up = _round_up(hw, 128)
    return min(max_chunk, hw_up, 8192)     # 8192-lane cap bounds the fold unroll


def _per_row_dice(x2, t2):
    """Per-row dice for a (R, HW) slab; returns a (R,) float32 array."""
    R, HW = x2.shape

    # Degenerate tiny spatial extent: pad up to one 128-lane tile so the block
    # last dim never exceeds the array extent (zeros don't change the sums).
    if HW < 128:
        pad = 128 - HW
        x2 = jnp.pad(x2, ((0, 0), (0, pad)))
        t2 = jnp.pad(t2, ((0, 0), (0, pad)))
        HW = 128

    itemsizes = (jnp.dtype(x2.dtype).itemsize, jnp.dtype(t2.dtype).itemsize)
    min_sublane = {1: 32, 2: 16}.get(min(itemsizes), 8)
    tr = _pick_row_tile(R, min_sublane)
    chunk = _pick_chunk(HW, tr, sum(itemsizes))
    n_k = -(-HW // chunk)
    grid = (-(-R // tr), n_k)

    cost = pl.CostEstimate(
        flops=6 * R * HW,
        transcendentals=0,
        bytes_accessed=R * HW * sum(itemsizes) + R * 4,
    )

    dices = pl.pallas_call(
        _make_dice_kernel(chunk=chunk, hw=HW, n_k=n_k, tr=tr),
        out_shape=jax.ShapeDtypeStruct((R, 1), jnp.float32),
        grid_spec=pltpu.PrefetchScalarGridSpec(
            num_scalar_prefetch=0,
            grid=grid,
            in_specs=[
                pl.BlockSpec((tr, chunk), lambda i, k: (i, k)),
                pl.BlockSpec((tr, chunk), lambda i, k: (i, k)),
            ],
            out_specs=pl.BlockSpec((tr, 1), lambda i, k: (i, 0)),
            scratch_shapes=[
                pltpu.VMEM((tr, 128), jnp.float32),
                pltpu.VMEM((tr, 128), jnp.float32),
                pltpu.VMEM((tr, 128), jnp.float32),
            ],
        ),
        compiler_params=pltpu.CompilerParams(
            dimension_semantics=("parallel", "arbitrary"),
            vmem_limit_bytes=32 * 1024 * 1024),
        cost_estimate=cost,
    )(x2, t2)
    return dices[:, 0]


def dice_loss_2d(inputs, target, skip_bg=True):
    """DiceLoss2D forward: inputs/target are (B, C, H, W) arrays."""
    B, C, H, W = inputs.shape
    # Free reshapes of contiguous NCHW arrays; native dtypes go to the kernel.
    x2 = inputs.reshape(B * C, H * W)
    t2 = target.reshape(B * C, H * W)

    dices = _per_row_dice(x2, t2).reshape(B, C)
    if skip_bg:
        dices = dices[:, 1:]               # tiny (B, C) array: slice is negligible
        num_classes = C - 1
    else:
        num_classes = C
    avg_dices = jnp.sum(dices, axis=1) / num_classes
    return jnp.mean(avg_dices)


def _dice_loss_2d_ref(inputs, target, skip_bg=True):
    """Pure-JAX reference mirroring the PyTorch forward."""
    eps = 0.0001
    if skip_bg:
        x = inputs[:, 1:]
        t = target[:, 1:]
    else:
        x = inputs
        t = target
    num = 2 * jnp.sum(t * x, axis=(2, 3)) + eps
    den = jnp.sum(t * t, axis=(2, 3)) + jnp.sum(x * x, axis=(2, 3)) + eps
    dices = 1 - num / den
    avg_dices = jnp.sum(dices, axis=1) / x.shape[1]
    return jnp.mean(avg_dices)


if __name__ == "__main__":
    key = jax.random.PRNGKey(0)
    k1, k2, k3, k4 = jax.random.split(key, 4)

    # Primary shape implied by the module spec.
    B, C, H, W = 2, 4, 16, 16
    logits = jax.random.normal(k1, (B, C, H, W), dtype=jnp.float32)
    inputs = jax.nn.softmax(logits, axis=1)
    labels = jax.random.randint(k2, (B, H, W), 0, C)
    target = jax.nn.one_hot(labels, C, axis=1, dtype=jnp.float32)

    loss = jax.block_until_ready(dice_loss_2d(inputs, target, skip_bg=True))
    ref = _dice_loss_2d_ref(inputs, target, skip_bg=True)
    assert jnp.allclose(loss, ref, rtol=1e-5, atol=1e-6), (loss, ref)

    loss_nb = jax.block_until_ready(dice_loss_2d(inputs, target, skip_bg=False))
    ref_nb = _dice_loss_2d_ref(inputs, target, skip_bg=False)
    assert jnp.allclose(loss_nb, ref_nb, rtol=1e-5, atol=1e-6), (loss_nb, ref_nb)

    # Ragged case: B*C = 15 rows (masked last row tile) and H*W = 240 lanes
    # (exercises the in-kernel tail lane mask with no wrapper-side padding).
    B2, C2, H2, W2 = 3, 5, 12, 20
    logits2 = jax.random.normal(k3, (B2, C2, H2, W2), dtype=jnp.float32)
    inputs2 = jax.nn.softmax(logits2, axis=1)
    labels2 = jax.random.randint(k4, (B2, H2, W2), 0, C2)
    target2 = jax.nn.one_hot(labels2, C2, axis=1, dtype=jnp.float32)

    loss2 = jax.block_until_ready(dice_loss_2d(inputs2, target2, skip_bg=True))
    ref2 = _dice_loss_2d_ref(inputs2, target2, skip_bg=True)
    assert jnp.allclose(loss2, ref2, rtol=1e-5, atol=1e-6), (loss2, ref2)

    print("KERNEL_OK")
</pallas_src>

<mosaic_0001>
module attributes {stable_mosaic.version = 11 : i64} {
  func.func @kernel(%arg0: i32, %arg1: i32, %arg2: memref<8x256xf32, #tpu.memory_space<vmem>>, %arg3: memref<8x256xf32, #tpu.memory_space<vmem>>, %arg4: memref<8x1xf32, #tpu.memory_space<vmem>>, %arg5: memref<8x128xf32, #tpu.memory_space<vmem>>, %arg6: memref<8x128xf32, #tpu.memory_space<vmem>>, %arg7: memref<8x128xf32, #tpu.memory_space<vmem>>) attributes {dimension_semantics = [#tpu.dimension_semantics<parallel>, #tpu.dimension_semantics<arbitrary>], iteration_bounds = array<i64: 1, 1>, scalar_prefetch = 0 : i64, scratch_operands = 3 : i64, tpu.core_type = #tpu.core_type<tc>, window_params = [{transform_indices = @transform_0, window_bounds = array<i64: 8, 256>}, {transform_indices = @transform_1, window_bounds = array<i64: 8, 256>}, {transform_indices = @transform_2, window_bounds = array<i64: 8, 1>}]} {
    %c0_i32 = arith.constant 0 : i32
    %0 = arith.cmpi eq, %arg1, %c0_i32 : i32
    %1 = arith.extui %0 : i1 to i32
    %c0_i32_0 = arith.constant 0 : i32
    %2 = arith.cmpi ne, %1, %c0_i32_0 : i32
    scf.if %2 {
      %cst_23 = arith.constant 0.000000e+00 : f32
      %34 = vector.broadcast %cst_23 : f32 to vector<8x128xf32>
      %c0_24 = arith.constant 0 : index
      %c0_25 = arith.constant 0 : index
      %35 = vector.load %arg5[%c0_24, %c0_25] : memref<8x128xf32, #tpu.memory_space<vmem>>, vector<8x128xf32>
      tpu.vector_store %arg5[%c0_24, %c0_25], %34 {strides = array<i32>} : memref<8x128xf32, #tpu.memory_space<vmem>>, vector<8x128xf32>,
      %cst_26 = arith.constant 0.000000e+00 : f32
      %36 = vector.broadcast %cst_26 : f32 to vector<8x128xf32>
      %c0_27 = arith.constant 0 : index
      %c0_28 = arith.constant 0 : index
      %37 = vector.load %arg6[%c0_27, %c0_28] : memref<8x128xf32, #tpu.memory_space<vmem>>, vector<8x128xf32>
      tpu.vector_store %arg6[%c0_27, %c0_28], %36 {strides = array<i32>} : memref<8x128xf32, #tpu.memory_space<vmem>>, vector<8x128xf32>,
      %cst_29 = arith.constant 0.000000e+00 : f32
      %38 = vector.broadcast %cst_29 : f32 to vector<8x128xf32>
      %c0_30 = arith.constant 0 : index
      %c0_31 = arith.constant 0 : index
      %39 = vector.load %arg7[%c0_30, %c0_31] : memref<8x128xf32, #tpu.memory_space<vmem>>, vector<8x128xf32>
      tpu.vector_store %arg7[%c0_30, %c0_31], %38 {strides = array<i32>} : memref<8x128xf32, #tpu.memory_space<vmem>>, vector<8x128xf32>,
    } else {
    }
    %cst = arith.constant 0.000000e+00 : f32
    %3 = vector.broadcast %cst : f32 to vector<8x128xf32>
    %cst_1 = arith.constant 0.000000e+00 : f32
    %4 = vector.broadcast %cst_1 : f32 to vector<8x128xf32>
    %cst_2 = arith.constant 0.000000e+00 : f32
    %5 = vector.broadcast %cst_2 : f32 to vector<8x128xf32>
    %c0 = arith.constant 0 : index
    %c0_3 = arith.constant 0 : index
    %6 = vector.load %arg2[%c0, %c0_3] : memref<8x256xf32, #tpu.memory_space<vmem>>, vector<8x128xf32>
    %c0_4 = arith.constant 0 : index
    %c0_5 = arith.constant 0 : index
    %7 = vector.load %arg3[%c0_4, %c0_5] : memref<8x256xf32, #tpu.memory_space<vmem>>, vector<8x128xf32>
    %8 = arith.mulf %6, %7 : vector<8x128xf32>
    %9 = arith.addf %3, %8 : vector<8x128xf32>
    %10 = arith.mulf %7, %7 : vector<8x128xf32>
    %11 = arith.addf %4, %10 : vector<8x128xf32>
    %12 = arith.mulf %6, %6 : vector<8x128xf32>
    %13 = arith.addf %5, %12 : vector<8x128xf32>
    %c0_6 = arith.constant 0 : index
    %c128 = arith.constant 128 : index
    %14 = vector.load %arg2[%c0_6, %c128] : memref<8x256xf32, #tpu.memory_space<vmem>>, vector<8x128xf32>
    %c0_7 = arith.constant 0 : index
    %c128_8 = arith.constant 128 : index
    %15 = vector.load %arg3[%c0_7, %c128_8] : memref<8x256xf32, #tpu.memory_space<vmem>>, vector<8x128xf32>
    %16 = arith.mulf %14, %15 : vector<8x128xf32>
    %17 = arith.addf %9, %16 : vector<8x128xf32>
    %18 = arith.mulf %15, %15 : vector<8x128xf32>
    %19 = arith.addf %11, %18 : vector<8x128xf32>
    %20 = arith.mulf %14, %14 : vector<8x128xf32>
    %21 = arith.addf %13, %20 : vector<8x128xf32>
    %c0_9 = arith.constant 0 : index
    %c0_10 = arith.constant 0 : index
    %22 = vector.load %arg5[%c0_9, %c0_10] : memref<8x128xf32, #tpu.memory_space<vmem>>, vector<8x128xf32>
    %23 = arith.addf %22, %17 : vector<8x128xf32>
    %c0_11 = arith.constant 0 : index
    %c0_12 = arith.constant 0 : index
    %24 = vector.load %arg5[%c0_11, %c0_12] : memref<8x128xf32, #tpu.memory_space<vmem>>, vector<8x128xf32>
    tpu.vector_store %arg5[%c0_11, %c0_12], %23 {strides = array<i32>} : memref<8x128xf32, #tpu.memory_space<vmem>>, vector<8x128xf32>,
    %c0_13 = arith.constant 0 : index
    %c0_14 = arith.constant 0 : index
    %25 = vector.load %arg6[%c0_13, %c0_14] : memref<8x128xf32, #tpu.memory_space<vmem>>, vector<8x128xf32>
    %26 = arith.addf %25, %19 : vector<8x128xf32>
    %c0_15 = arith.constant 0 : index
    %c0_16 = arith.constant 0 : index
    %27 = vector.load %arg6[%c0_15, %c0_16] : memref<8x128xf32, #tpu.memory_space<vmem>>, vector<8x128xf32>
    tpu.vector_store %arg6[%c0_15, %c0_16], %26 {strides = array<i32>} : memref<8x128xf32, #tpu.memory_space<vmem>>, vector<8x128xf32>,
    %c0_17 = arith.constant 0 : index
    %c0_18 = arith.constant 0 : index
    %28 = vector.load %arg7[%c0_17, %c0_18] : memref<8x128xf32, #tpu.memory_space<vmem>>, vector<8x128xf32>
    %29 = arith.addf %28, %21 : vector<8x128xf32>
    %c0_19 = arith.constant 0 : index
    %c0_20 = arith.constant 0 : index
    %30 = vector.load %arg7[%c0_19, %c0_20] : memref<8x128xf32, #tpu.memory_space<vmem>>, vector<8x128xf32>
    tpu.vector_store %arg7[%c0_19, %c0_20], %29 {strides = array<i32>} : memref<8x128xf32, #tpu.memory_space<vmem>>, vector<8x128xf32>,
    %c0_i32_21 = arith.constant 0 : i32
    %31 = arith.cmpi eq, %arg1, %c0_i32_21 : i32
    %32 = arith.extui %31 : i1 to i32
    %c0_i32_22 = arith.constant 0 : i32
    %33 = arith.cmpi ne, %32, %c0_i32_22 : i32
    scf.if %33 {
      %c0_23 = arith.constant 0 : index
      %c0_24 = arith.constant 0 : index
      %34 = vector.load %arg5[%c0_23, %c0_24] : memref<8x128xf32, #tpu.memory_space<vmem>>, vector<8x128xf32>
      %cst_25 = arith.constant dense<0.000000e+00> : vector<8xf32>
      %35 = vector.multi_reduction <add>, %34, %cst_25 [1] : vector<8x128xf32> to vector<8xf32>
      %36 = vector.shape_cast %35 : vector<8xf32> to vector<8x1xf32>
      %cst_26 = arith.constant 2.000000e+00 : f32
      %37 = vector.broadcast %cst_26 : f32 to vector<8x1xf32>
      %38 = arith.mulf %37, %36 : vector<8x1xf32>
      %cst_27 = arith.constant 9.99999974E-5 : f32
      %39 = vector.broadcast %cst_27 : f32 to vector<8x1xf32>
      %40 = arith.addf %38, %39 : vector<8x1xf32>
      %c0_28 = arith.constant 0 : index
      %c0_29 = arith.constant 0 : index
      %41 = vector.load %arg6[%c0_28, %c0_29] : memref<8x128xf32, #tpu.memory_space<vmem>>, vector<8x128xf32>
      %c0_30 = arith.constant 0 : index
      %c0_31 = arith.constant 0 : index
      %42 = vector.load %arg7[%c0_30, %c0_31] : memref<8x128xf32, #tpu.memory_space<vmem>>, vector<8x128xf32>
      %43 = arith.addf %41, %42 : vector<8x128xf32>
      %cst_32 = arith.constant dense<0.000000e+00> : vector<8xf32>
      %44 = vector.multi_reduction <add>, %43, %cst_32 [1] : vector<8x128xf32> to vector<8xf32>
      %45 = vector.shape_cast %44 : vector<8xf32> to vector<8x1xf32>
      %cst_33 = arith.constant 9.99999974E-5 : f32
      %46 = vector.broadcast %cst_33 : f32 to vector<8x1xf32>
      %47 = arith.addf %45, %46 : vector<8x1xf32>
      %48 = arith.divf %40, %47 : vector<8x1xf32>
      %cst_34 = arith.constant 1.000000e+00 : f32
      %49 = vector.broadcast %cst_34 : f32 to vector<8x1xf32>
      %50 = arith.subf %49, %48 : vector<8x1xf32>
      %c0_35 = arith.constant 0 : index
      %c0_36 = arith.constant 0 : index
      %51 = vector.load %arg4[%c0_35, %c0_36] : memref<8x1xf32, #tpu.memory_space<vmem>>, vector<8x1xf32>
      tpu.vector_store %arg4[%c0_35, %c0_36], %50 {strides = array<i32>} : memref<8x1xf32, #tpu.memory_space<vmem>>, vector<8x1xf32>,
    } else {
    }
    return
  }
  func.func @transform_0(%arg0: i32, %arg1: i32) -> (i32, i32) {
    %c0_i32 = arith.constant 0 : i32
    return %arg0, %arg1 : i32, i32
  }
  func.func @transform_1(%arg0: i32, %arg1: i32) -> (i32, i32) {
    %c0_i32 = arith.constant 0 : i32
    return %arg0, %arg1 : i32, i32
  }
  func.func @transform_2(%arg0: i32, %arg1: i32) -> (i32, i32) {
    %c0_i32 = arith.constant 0 : i32
    %c0_i32_0 = arith.constant 0 : i32
    return %arg0, %c0_i32 : i32, i32
  }
}

</mosaic_0001>

<bundles_post_ra>
// kernel: tpu_custom_call.1
= control target key start
LH: loop header
LB: loop body
LE: loop exit
PB: predicated region body
PF: predicated region fallthrough
CT: control target
= control target key end

     0   :  { %7 = vsyncpa [#allocation6], 0  ;;  %s166_s0 = inlined_call_operand.hbm [shape: f32[8,256], index: 0, kind: input, shape index: {}]   ;;  %s167_s1 = inlined_call_operand.hbm [shape: f32[8,256], index: 1, kind: input, shape index: {}]   ;;  %s168_s2 = inlined_call_operand.vmem [shape: f32[8,1], index: 2, kind: output, shape index: {}]  }
   0x1   :  { %8 = vsyncpa [#allocation8], 0  ;;  %s140_s9 = smov [#allocation5]   ;;  %s141_s11 = smov [#allocation7]  }
   0x2   :  { %s15_s10 = sshll.u32 %s140_s9, 4  ;;  %s25_s12 = sshll.u32 %s141_s11, 4  ;;  %s16_s10 = int_to_ptr.vmem [resolvable:$true] %s15_s10  ;;  %s26_s12 = int_to_ptr.vmem [resolvable:$true] %s25_s12 }
   0x3   :  { %s104_s13 = scalar_lea.vmem %s16_s10, 256  ;;  %p109_p1 = scmp.lt.s32.totalorder %s16_s10, %s16_s10 }
   0x4   :  { %p105_p0 = scmp.ne.s32.totalorder %s16_s10, %s104_s13  ;;  %p110_p2 = scmp.lt.s32.totalorder %s104_s13, %s104_s13 }
   0x6   :  { %p111_p3 = por %p110_p2, %p109_p1 }
   0x8   :  { %p112_p4 = pnand %p111_p3, %p105_p0 }
   0xa   :  { %115 = shalt.err (!%p112_p4)
}
   0xb   :  { %18 = dma.hbm_to_vmem [thread:$0]  %s166_s0, 256, %s16_s10, [#allocation6]  }
   0xc   :  { %s124_s16 = scalar_lea.vmem %s26_s12, 256  ;;  %p129_p6 = scmp.lt.s32.totalorder %s26_s12, %s26_s12 }
   0xd   :  { %p125_p5 = scmp.ne.s32.totalorder %s26_s12, %s124_s16  ;;  %p130_p7 = scmp.lt.s32.totalorder %s124_s16, %s124_s16 }
   0xf   :  { %p131_p8 = por %p130_p7, %p129_p6 }
  0x11   :  { %p132_p9 = pnand %p131_p8, %p125_p5 }
  0x13   :  { %135 = shalt.err (!%p132_p9)
}
  0x14   :  { %28 = dma.hbm_to_vmem [thread:$0]  %s167_s1, 256, %s26_s12, [#allocation8]  }
  0x15   :  { %136 = dma.done.wait [#allocation6], 256  }
  0x16   :  { %137 = vsyncadd [#allocation6], 4294967040 }
  0x17   :  { %138 = dma.done.wait [#allocation8], 256  }
  0x18   :  { %139 = vsyncadd [#allocation8], 4294967040  ;;  %v42_v0 = vld [vmem:[#allocation5] sm:$0xff]  ;;  %v43_v1 = vld [vmem:[#allocation7] sm:$0xff]  ;;  %vm84_vm0 = vcmask 7168  }
  0x19   :  { %v50_v2 = vld [vmem:[#allocation5 + $0x8] sm:$0xff]  ;;  %v46_v3 = vmul.f32 %v43_v1, %v43_v1  ;;  %v48_v4 = vmul.f32 %v42_v0, %v42_v0  ;;  %v51_v5 = vld [vmem:[#allocation7 + $0x8] sm:$0xff]  ;;  %v44_v10 = vmul.f32 %v43_v1, %v42_v0 }
  0x1a   :  { %v56_v6 = vmul.f32 %v50_v2, %v50_v2  ;;  %v54_v7 = vmul.f32 %v51_v5, %v51_v5  ;;  %v52_v11 = vmul.f32 %v51_v5, %v50_v2 }
  0x1c   :  { %v57_v8 = vadd.f32 %v56_v6, %v48_v4  ;;  %v55_v9 = vadd.f32 %v54_v7, %v46_v3  ;;  %v53_v13 = vadd.f32 %v52_v11, %v44_v10 }
  0x1e   :  { %v77_v12 = vadd.f32 %v57_v8, %v55_v9 }
  0x20   :  { %78 = vadd.xlane.f32.xlu0 %v77_v12 }
  0x24   :  { %71 = vadd.xlane.f32.xlu0 %v53_v13 }
  0xa9   :  { %v79_v14 = vpop.xlane.xlu0 %78 }
  0xaa   :  { %v80_v15 = vadd.f32 0.0001, %v79_v14 }
  0xac   :  { %94 = vrcp.f32 %v80_v15 }
  0xad   :  { %v72_v16 = vpop.xlane.xlu0 %71 }
  0xae   :  { %v73_v17 = vmul.f32 2.0, %v72_v16 }
  0xb0   :  { %v74_v18 = vadd.f32 0.0001, %v73_v17 }
  0xb9   :  { %v95_v19 = vpop.eup %94 }
  0xba   :  { %v82_v20 = vmul.f32 %v95_v19, %v74_v18 }
  0xbc   :  { %v83_v21 = vsub.f32 1.0, %v82_v20 }
  0xbe   :  { %85 = vst.msk [vmem:[%s168_s2] sm:$0xff] %vm84_vm0, %v83_v21 }
  0xbf   :  { %90 = vsyncpa [#allocation6], 1 }
  0xc0   :  { %91 = vsyncpa [#allocation8], 1 }

</bundles_post_ra>
